<compile_context>
chip_gen: v7x
topology: tpu7x:2x2x1
jax: 0.10.0
libtpu: 0.0.40
codegen_flags: <defaults>
</compile_context>

<pallas_src>
import functools

import jax
import jax.numpy as jnp
from jax.experimental import pallas as pl
from jax.experimental.pallas import tpu as pltpu


def _ce2d_kernel(x_ref, t_ref, out_ref, sum_ref, cnt_ref, *, hw, tile_hw):
    n = pl.program_id(0)          # batch index
    p = pl.program_id(1)          # pixel-tile index

    @pl.when(jnp.logical_and(n == 0, p == 0))
    def _():
        sum_ref[...] = jnp.zeros_like(sum_ref)
        cnt_ref[...] = jnp.zeros_like(cnt_ref)

    x = x_ref[...].astype(jnp.float32)      # (C, tile_hw) logits (cast in VMEM)
    t = t_ref[...].astype(jnp.int32)        # (1, tile_hw) raw labels

    # Tail mask: the last pixel tile may extend past H*W; those lanes hold garbage.
    lane = jax.lax.broadcasted_iota(jnp.int32, t.shape, 1)          # (1, tile_hw)
    in_bounds = (p * tile_hw + lane) < hw
    valid = jnp.logical_and(t > 0, in_bounds)                       # (1, tile_hw)
    tm = jnp.where(valid, t - 1, 0)                                 # shifted class ids

    # Per-pixel logsumexp over channels (sublane axis).
    m = jnp.max(x, axis=0, keepdims=True)                               # (1, tile_hw)
    lse = m + jnp.log(jnp.sum(jnp.exp(x - m), axis=0, keepdims=True))   # (1, tile_hw)

    # Gather the target logit via one-hot select over channels.
    cls = jax.lax.broadcasted_iota(jnp.int32, x.shape, 0)               # (C, tile_hw)
    tgt_logit = jnp.sum(jnp.where(cls == tm, x, 0.0), axis=0, keepdims=True)

    loss = lse - tgt_logit                                              # per-pixel CE

    # Lane-parallel accumulation (no per-tile cross-lane reduce, no scalar carry).
    sum_ref[...] += jnp.where(valid, loss, 0.0)
    cnt_ref[...] += valid.astype(jnp.float32)

    @pl.when(jnp.logical_and(n == pl.num_programs(0) - 1,
                             p == pl.num_programs(1) - 1))
    def _():
        total = jnp.sum(sum_ref[...], axis=1, keepdims=True)            # (1, 1)
        count = jnp.sum(cnt_ref[...], axis=1, keepdims=True)            # (1, 1)
        out_ref[...] = total / count


def cross_entropy_loss_2d(inputs_scales, targets_scales, tile_hw_target=131072):
    x = inputs_scales[0]                       # (N, C, H, W) logits, any float dtype
    N, C, H, W = x.shape
    HW = H * W

    # Free trailing-dim merges: no HBM data movement, no dtype change of the logits.
    x3 = x.reshape(N, C, HW)
    t3 = targets_scales.reshape(N, 1, HW).astype(jnp.int32)

    # Cap the pixel tile so the double-buffered inputs + f32 accumulators stay well
    # inside even the smallest scoped-VMEM default (v5e: 16 MiB).
    bytes_per_px = 2 * (C * x.dtype.itemsize + t3.dtype.itemsize) + 2 * 4
    budget = 12 * 1024 * 1024
    tile_cap = max(128, (budget // bytes_per_px) // 128 * 128)
    tile_hw_target = min(tile_hw_target, tile_cap)

    if HW <= tile_hw_target:
        tile_hw = HW                           # full pixel extent in one block
    else:
        tile_hw = (tile_hw_target // 128) * 128  # lane-aligned tile, tail masked in-kernel
    grid_p = pl.cdiv(HW, tile_hw)

    kernel = functools.partial(_ce2d_kernel, hw=HW, tile_hw=tile_hw)

    out = pl.pallas_call(
        kernel,
        out_shape=jax.ShapeDtypeStruct((1, 1), jnp.float32),
        grid_spec=pltpu.PrefetchScalarGridSpec(
            num_scalar_prefetch=0,
            grid=(N, grid_p),
            in_specs=[
                # batch dim squeezed; kernel sees (C, tile_hw) / (1, tile_hw)
                pl.BlockSpec((None, C, tile_hw), lambda n, p: (n, 0, p)),
                pl.BlockSpec((None, 1, tile_hw), lambda n, p: (n, 0, p)),
            ],
            out_specs=pl.BlockSpec((1, 1), lambda n, p: (0, 0)),
            scratch_shapes=[
                pltpu.VMEM((1, tile_hw), jnp.float32),   # masked-loss accumulator
                pltpu.VMEM((1, tile_hw), jnp.float32),   # mask-count accumulator
            ],
        ),
        compiler_params=pltpu.CompilerParams(
            dimension_semantics=("arbitrary", "arbitrary"),
            vmem_limit_bytes=32 * 1024 * 1024,
        ),
    )(x3, t3)
    return out[0, 0]


def _reference_loss(inputs_scales, targets_scales):
    x = inputs_scales[0]
    a, b, c, d = targets_scales.shape
    t = targets_scales.reshape(a, c, d)
    mask = t > 0
    tm = jnp.where(mask, t - 1, 0).astype(jnp.int32)
    logp = jax.nn.log_softmax(x.astype(jnp.float32), axis=1)
    loss = -jnp.take_along_axis(logp, tm[:, None, :, :], axis=1)[:, 0]
    return jnp.sum(jnp.where(mask, loss, 0.0)) / jnp.sum(mask.astype(jnp.float32))


if __name__ == "__main__":
    key = jax.random.PRNGKey(0)
    k_x, k_t = jax.random.split(key)

    # Primary config (matches the module's expected shapes).
    N, C, H, W = 2, 4, 16, 16
    x = jax.random.normal(k_x, (N, C, H, W), dtype=jnp.float32)
    # labels in [0, C]: 0 = ignore, 1..C map to classes 0..C-1
    targets = jax.random.randint(k_t, (N, 1, H, W), 0, C + 1, dtype=jnp.int32)

    out = jax.block_until_ready(cross_entropy_loss_2d([x], targets))
    ref = jax.block_until_ready(_reference_loss([x], targets))
    assert jnp.allclose(out, ref, rtol=1e-5, atol=1e-5), (out, ref)

    # Second config: exercises the multi-tile path and the in-kernel ragged-tail mask
    # (HW = 400 pixels with a 128-wide tile -> last tile is partial).
    N2, C2, H2, W2 = 2, 4, 20, 20
    x2 = jax.random.normal(k_x, (N2, C2, H2, W2), dtype=jnp.float32)
    t2 = jax.random.randint(k_t, (N2, 1, H2, W2), 0, C2 + 1, dtype=jnp.int32)
    out2 = jax.block_until_ready(cross_entropy_loss_2d([x2], t2, tile_hw_target=128))
    ref2 = jax.block_until_ready(_reference_loss([x2], t2))
    assert jnp.allclose(out2, ref2, rtol=1e-5, atol=1e-5), (out2, ref2)

    print("KERNEL_OK")
</pallas_src>

<mosaic_0001>
module attributes {stable_mosaic.version = 11 : i64} {
  func.func @_ce2d_kernel(%arg0: i32, %arg1: i32, %arg2: memref<1x4x256xf32, #tpu.memory_space<vmem>>, %arg3: memref<1x1x256xi32, #tpu.memory_space<vmem>>, %arg4: memref<1x1xf32, #tpu.memory_space<vmem>>, %arg5: memref<1x256xf32, #tpu.memory_space<vmem>>, %arg6: memref<1x256xf32, #tpu.memory_space<vmem>>) attributes {dimension_semantics = [#tpu.dimension_semantics<arbitrary>, #tpu.dimension_semantics<arbitrary>], iteration_bounds = array<i64: 2, 1>, scalar_prefetch = 0 : i64, scratch_operands = 2 : i64, tpu.core_type = #tpu.core_type<tc>, window_params = [{transform_indices = @transform_0, window_bounds = array<i64: 1, 4, 256>}, {transform_indices = @transform_1, window_bounds = array<i64: 1, 1, 256>}, {pipeline_mode = #tpu.pipeline_mode<synchronous>, transform_indices = @transform_2, window_bounds = array<i64: 1, 1>}]} {
    %c0_i32 = arith.constant 0 : i32
    %0 = arith.cmpi eq, %arg0, %c0_i32 : i32
    %c0_i32_0 = arith.constant 0 : i32
    %1 = arith.cmpi eq, %arg1, %c0_i32_0 : i32
    %2 = arith.andi %0, %1 : i1
    %3 = arith.extui %2 : i1 to i32
    %c0_i32_1 = arith.constant 0 : i32
    %4 = arith.cmpi ne, %3, %c0_i32_1 : i32
    scf.if %4 {
      %cst_25 = arith.constant 0.000000e+00 : f32
      %54 = vector.broadcast %cst_25 : f32 to vector<1x256xf32>
      %c0_26 = arith.constant 0 : index
      %c0_27 = arith.constant 0 : index
      %55 = vector.load %arg5[%c0_26, %c0_27] : memref<1x256xf32, #tpu.memory_space<vmem>>, vector<1x256xf32>
      tpu.vector_store %arg5[%c0_26, %c0_27], %54 {strides = array<i32>} : memref<1x256xf32, #tpu.memory_space<vmem>>, vector<1x256xf32>,
      %cst_28 = arith.constant 0.000000e+00 : f32
      %56 = vector.broadcast %cst_28 : f32 to vector<1x256xf32>
      %c0_29 = arith.constant 0 : index
      %c0_30 = arith.constant 0 : index
      %57 = vector.load %arg6[%c0_29, %c0_30] : memref<1x256xf32, #tpu.memory_space<vmem>>, vector<1x256xf32>
      tpu.vector_store %arg6[%c0_29, %c0_30], %56 {strides = array<i32>} : memref<1x256xf32, #tpu.memory_space<vmem>>, vector<1x256xf32>,
    } else {
    }
    %c0 = arith.constant 0 : index
    %c0_2 = arith.constant 0 : index
    %c0_3 = arith.constant 0 : index
    %5 = vector.load %arg2[%c0, %c0_2, %c0_3] : memref<1x4x256xf32, #tpu.memory_space<vmem>>, vector<1x4x256xf32>
    %6 = vector.shape_cast %5 : vector<1x4x256xf32> to vector<4x256xf32>
    %c0_4 = arith.constant 0 : index
    %c0_5 = arith.constant 0 : index
    %c0_6 = arith.constant 0 : index
    %7 = vector.load %arg3[%c0_4, %c0_5, %c0_6] : memref<1x1x256xi32, #tpu.memory_space<vmem>>, vector<1x1x256xi32>
    %8 = vector.shape_cast %7 : vector<1x1x256xi32> to vector<1x256xi32>
    %9 = tpu.iota {dimensions = array<i32: 1>} : vector<1x256xi32>
    %c256_i32 = arith.constant 256 : i32
    %10 = arith.muli %arg1, %c256_i32 : i32
    %11 = vector.broadcast %10 : i32 to vector<1x256xi32>
    %12 = arith.addi %11, %9 : vector<1x256xi32>
    %c256_i32_7 = arith.constant 256 : i32
    %13 = vector.broadcast %c256_i32_7 : i32 to vector<1x256xi32>
    %14 = arith.cmpi slt, %12, %13 : vector<1x256xi32>
    %c0_i32_8 = arith.constant 0 : i32
    %15 = vector.broadcast %c0_i32_8 : i32 to vector<1x256xi32>
    %16 = arith.cmpi sgt, %8, %15 : vector<1x256xi32>
    %17 = arith.andi %16, %14 : vector<1x256xi1>
    %c1_i32 = arith.constant 1 : i32
    %18 = vector.broadcast %c1_i32 : i32 to vector<1x256xi32>
    %19 = arith.subi %8, %18 : vector<1x256xi32>
    %c0_i32_9 = arith.constant 0 : i32
    %20 = vector.broadcast %c0_i32_9 : i32 to vector<1x256xi32>
    %21 = arith.select %17, %19, %20 : vector<1x256xi1>, vector<1x256xi32>
    %cst = arith.constant dense<0xFF800000> : vector<256xf32>
    %22 = vector.multi_reduction <maximumf>, %6, %cst [0] : vector<4x256xf32> to vector<256xf32>
    %23 = vector.shape_cast %22 : vector<256xf32> to vector<1x256xf32>
    %24 = vector.broadcast %23 : vector<1x256xf32> to vector<4x256xf32>
    %25 = arith.subf %6, %24 : vector<4x256xf32>
    %26 = math.exp %25 : vector<4x256xf32>
    %cst_10 = arith.constant dense<0.000000e+00> : vector<256xf32>
    %27 = vector.multi_reduction <add>, %26, %cst_10 [0] : vector<4x256xf32> to vector<256xf32>
    %28 = vector.shape_cast %27 : vector<256xf32> to vector<1x256xf32>
    %29 = math.log %28 : vector<1x256xf32>
    %30 = arith.addf %23, %29 : vector<1x256xf32>
    %31 = tpu.iota {dimensions = array<i32: 0>} : vector<4x256xi32>
    %32 = vector.broadcast %21 : vector<1x256xi32> to vector<4x256xi32>
    %33 = arith.cmpi eq, %31, %32 : vector<4x256xi32>
    %cst_11 = arith.constant 0.000000e+00 : f32
    %34 = vector.broadcast %cst_11 : f32 to vector<4x256xf32>
    %35 = arith.select %33, %6, %34 : vector<4x256xi1>, vector<4x256xf32>
    %cst_12 = arith.constant dense<0.000000e+00> : vector<256xf32>
    %36 = vector.multi_reduction <add>, %35, %cst_12 [0] : vector<4x256xf32> to vector<256xf32>
    %37 = vector.shape_cast %36 : vector<256xf32> to vector<1x256xf32>
    %38 = arith.subf %30, %37 : vector<1x256xf32>
    %c0_13 = arith.constant 0 : index
    %c0_14 = arith.constant 0 : index
    %39 = vector.load %arg5[%c0_13, %c0_14] : memref<1x256xf32, #tpu.memory_space<vmem>>, vector<1x256xf32>
    %cst_15 = arith.constant 0.000000e+00 : f32
    %40 = vector.broadcast %cst_15 : f32 to vector<1x256xf32>
    %41 = arith.select %17, %38, %40 : vector<1x256xi1>, vector<1x256xf32>
    %42 = arith.addf %39, %41 : vector<1x256xf32>
    %c0_16 = arith.constant 0 : index
    %c0_17 = arith.constant 0 : index
    %43 = vector.load %arg5[%c0_16, %c0_17] : memref<1x256xf32, #tpu.memory_space<vmem>>, vector<1x256xf32>
    tpu.vector_store %arg5[%c0_16, %c0_17], %42 {strides = array<i32>} : memref<1x256xf32, #tpu.memory_space<vmem>>, vector<1x256xf32>,
    %c0_18 = arith.constant 0 : index
    %c0_19 = arith.constant 0 : index
    %44 = vector.load %arg6[%c0_18, %c0_19] : memref<1x256xf32, #tpu.memory_space<vmem>>, vector<1x256xf32>
    %45 = arith.extui %17 : vector<1x256xi1> to vector<1x256xi32>
    %46 = arith.sitofp %45 : vector<1x256xi32> to vector<1x256xf32>
    %47 = arith.addf %44, %46 : vector<1x256xf32>
    %c0_20 = arith.constant 0 : index
    %c0_21 = arith.constant 0 : index
    %48 = vector.load %arg6[%c0_20, %c0_21] : memref<1x256xf32, #tpu.memory_space<vmem>>, vector<1x256xf32>
    tpu.vector_store %arg6[%c0_20, %c0_21], %47 {strides = array<i32>} : memref<1x256xf32, #tpu.memory_space<vmem>>, vector<1x256xf32>,
    %c1_i32_22 = arith.constant 1 : i32
    %49 = arith.cmpi eq, %arg0, %c1_i32_22 : i32
    %c0_i32_23 = arith.constant 0 : i32
    %50 = arith.cmpi eq, %arg1, %c0_i32_23 : i32
    %51 = arith.andi %49, %50 : i1
    %52 = arith.extui %51 : i1 to i32
    %c0_i32_24 = arith.constant 0 : i32
    %53 = arith.cmpi ne, %52, %c0_i32_24 : i32
    scf.if %53 {
      %c0_25 = arith.constant 0 : index
      %c0_26 = arith.constant 0 : index
      %54 = vector.load %arg5[%c0_25, %c0_26] : memref<1x256xf32, #tpu.memory_space<vmem>>, vector<1x256xf32>
      %cst_27 = arith.constant dense<0.000000e+00> : vector<1xf32>
      %55 = vector.multi_reduction <add>, %54, %cst_27 [1] : vector<1x256xf32> to vector<1xf32>
      %56 = vector.shape_cast %55 : vector<1xf32> to vector<1x1xf32>
      %c0_28 = arith.constant 0 : index
      %c0_29 = arith.constant 0 : index
      %57 = vector.load %arg6[%c0_28, %c0_29] : memref<1x256xf32, #tpu.memory_space<vmem>>, vector<1x256xf32>
      %cst_30 = arith.constant dense<0.000000e+00> : vector<1xf32>
      %58 = vector.multi_reduction <add>, %57, %cst_30 [1] : vector<1x256xf32> to vector<1xf32>
      %59 = vector.shape_cast %58 : vector<1xf32> to vector<1x1xf32>
      %60 = arith.divf %56, %59 : vector<1x1xf32>
      %c0_31 = arith.constant 0 : index
      %c0_32 = arith.constant 0 : index
      %61 = vector.load %arg4[%c0_31, %c0_32] : memref<1x1xf32, #tpu.memory_space<vmem>>, vector<1x1xf32>
      tpu.vector_store %arg4[%c0_31, %c0_32], %60 {strides = array<i32>} : memref<1x1xf32, #tpu.memory_space<vmem>>, vector<1x1xf32>,
    } else {
    }
    return
  }
  func.func @transform_0(%arg0: i32, %arg1: i32) -> (i32, i32, i32) {
    %c0_i32 = arith.constant 0 : i32
    %c0_i32_0 = arith.constant 0 : i32
    return %arg0, %c0_i32, %arg1 : i32, i32, i32
  }
  func.func @transform_1(%arg0: i32, %arg1: i32) -> (i32, i32, i32) {
    %c0_i32 = arith.constant 0 : i32
    %c0_i32_0 = arith.constant 0 : i32
    return %arg0, %c0_i32, %arg1 : i32, i32, i32
  }
  func.func @transform_2(%arg0: i32, %arg1: i32) -> (i32, i32) {
    %c0_i32 = arith.constant 0 : i32
    %c0_i32_0 = arith.constant 0 : i32
    %c0_i32_1 = arith.constant 0 : i32
    return %c0_i32, %c0_i32_0 : i32, i32
  }
}

</mosaic_0001>

<bundles_post_ra>
// kernel: tpu_custom_call.1
= control target key start
LH: loop header
LB: loop body
LE: loop exit
PB: predicated region body
PF: predicated region fallthrough
CT: control target
= control target key end

     0   :  { %7 = vsyncpa [#allocation5], 0  ;;  %s1008_s0 = inlined_call_operand.hbm [shape: f32[2,4,256], index: 0, kind: input, shape index: {}]   ;;  %s1009_s1 = inlined_call_operand.hbm [shape: s32[2,1,256], index: 1, kind: input, shape index: {}]   ;;  %s1010_s2 = inlined_call_operand.hbm [shape: f32[1,1], index: 2, kind: output, shape index: {}]  }
   0x1   :  { %9 = vsyncpa [#allocation5 + $0x1], 0 }
   0x2   :  { %10 = vsyncpa [#allocation8], 0 }
   0x3   :  { %12 = vsyncpa [#allocation8 + $0x1], 0 }
   0x4   :  { %13 = vsyncpa [#allocation6], 0  ;;  %s773_s9 = smov 0   ;;  %s775_s10 = smov 0  }
   0x5   :  { %s777_s11 = smov 0   ;;  %s779_s12 = smov 0  }
   0x6   :  { %s781_s13 = smov 0   ;;  %s783_s14 = smov 0  }
   0x7 LB: > { %s501_s15 = sadd.s32 4294967295, %s749_s14   ;;  %s31_s16 = sadd.s32 1, %s745_s13  ;;  %s749_s14 = sphi %s783_s14, %s19_s14   ;;  %s745_s13 = sphi %s781_s13, %s1029_s13   ;;  %s741_s12 = sphi %s779_s12, %s1028_s12   ;;  %s737_s11 = sphi %s777_s11, %s1027_s11   ;;  %s733_s10 = sphi %s775_s10, %s1026_s10   ;;  %s729_s9 = sphi %s773_s9, %s1025_s9  }
   0x8   : > { %p33_p0 = scmp.ge.s32.totalorder %s31_s16, 2  ;;  %s40_s17 = sadd.s32 1, %s737_s11 }
   0x9   : > { %p47_p1 = scmp.ne.s32.totalorder %s737_s11, %s733_s10  ;;  %p48_p2 = scmp.eq.s32.totalorder %s749_s14, 0 }
   0xa   : > { %s1031_s16 = smov (%p33_p0, %s31_s16), 0  ;;  %p53_p4 = scmp.ne.s32.totalorder %s733_s10, %s729_s9 }
   0xb   : > { %p809_p3 = por %p48_p2, %p47_p1  ;;  %s35_s19 = ssub.s32 %s745_s13, %s1031_s16 }
   0xc   : > { %p54_p5 = scmp.eq.s32.totalorder %s501_s15, 0  ;;  %p38_p6 = scmp.eq.s32.totalorder %s35_s19, 0 }
   0xd   : > { %p540_p8 = scmp.lt.s32.totalorder %s749_s14, 2  ;;  %s827_s22 = sand.u32 1, %s737_s11  }
   0xe   : > { %p818_p7 = por %p54_p5, %p53_p4  ;;  %s521_s23 = sshll.u32 %s745_s13, 7 }
   0xf   : > { %s824_s21 = scalar_select %p38_p6, %s737_s11, %s40_s17  }
  0x10   : > { %s1013_s20 = scalar_select %p818_p7, 1, 0 }
  0x11   : > { %s504_s24 = sshll.u32 %s827_s22, 3  ;;  %s834_s27 = scalar_lea.hbm %s1008_s0, %s521_s23 }
  0x12   : > { %s130_s28 = scalar_lea.vmem [#allocation4], %s504_s24  ;;  %p838_p9 = pnand %p540_p8, %p809_p3 }
  0x13   : > { %s140_s29 = sshll.u32 %s130_s28, 4  ;;  %s127_s3 = scalar_lea.sflag [#allocation5], %s827_s22  ;;  %s842_s29 = int_to_ptr.vmem [resolvable:$true] %s140_s29 }
  0x14   : > { %s605_s4 = scalar_lea.hbm %s834_s27, 128  ;;  %p607_p13 = pneg %p838_p9 }
  0x15   : > { %p606_p12 = scmp.ne.s32.totalorder %s834_s27, %s605_s4  ;;  %s610_s7 = scalar_lea.hbm %s1008_s0, 256 }
  0x16   : > { %p611_p2 = scmp.lt.u32.totalorder %s834_s27, %s1008_s0  ;;  %p612_p3 = scmp.lt.u32.totalorder %s610_s7, %s605_s4 }
  0x17   : > { %p608_p0 = pnand %p607_p13, %p606_p12  ;;  %p614_p5 = scmp.lt.u32.totalorder %s605_s4, %s834_s27 }
  0x18   : > { %p613_p4 = por %p612_p3, %p611_p2 }
  0x19   : > { %p609_p1 = pneg %p608_p0 }
  0x1a   : > { %p615_p6 = por %p614_p5, %p613_p4 }
  0x1c   : > { %p616_p8 = pnand %p615_p6, %p609_p1 }
  0x1e   : > { %619 = shalt.err (!%p616_p8)
}
  0x1f   : > { %s620_s17 = scalar_lea.vmem %s842_s29, 128  ;;  %s751_s18 = smov [#allocation4]  }
  0x20   : > { %p621_p12 = scmp.ne.s32.totalorder %s842_s29, %s620_s17  ;;  %s625_s19 = sshll.u32 %s751_s18, 4  ;;  %s626_s19 = int_to_ptr.vmem [resolvable:$false] %s625_s19 }
  0x21   : > { %s627_s23 = scalar_lea.vmem %s626_s19, 256  ;;  %p628_p11 = scmp.lt.s32.totalorder %s842_s29, %s626_s19 }
  0x22   : > { %p623_p0 = pnand %p621_p12, %p607_p13  ;;  %p629_p2 = scmp.lt.s32.totalorder %s627_s23, %s620_s17 }
  0x24   : > { %p624_p10 = pneg %p623_p0  ;;  %p630_p3 = por %p629_p2, %p628_p11 }
  0x26   : > { %p631_p4 = pnand %p630_p3, %p624_p10 }
  0x28   : > { %634 = shalt.err (!%p631_p4)
}
  0x29   : > { %536 = dma.hbm_to_vmem [thread:$0]  (!%p838_p9), %s834_s27, 128, %s842_s29, %s127_s3  }
  0x2a   : > { %p1015_p1 = scmp.lt.s32.totalorder %s749_s14, 3  ;;  %p1016_p5 = scmp.ge.s32.totalorder %s749_s14, 1 }
  0x2b   : > { %s507_s25 = sshll.u32 %s827_s22, 1  ;;  %s522_s26 = sshll.u32 %s745_s13, 5 }
  0x2c   : > { %p876_p6 = pnand %p1016_p5, %p1015_p1  ;;  %s885_s5 = scalar_lea.hbm %s1009_s1, %s522_s26 }
  0x2d   : > { %s151_s6 = scalar_lea.vmem [#allocation7], %s507_s25  ;;  %s148_s27 = scalar_lea.sflag [#allocation8], %s827_s22 }
  0x2e   : > { %s1017_s24 = scalar_select %p876_p6, 1, 0 }
  0x2f   : > { %s161_s7 = sshll.u32 %s151_s6, 4  ;;  %s635_s29 = scalar_lea.hbm %s885_s5, 32  ;;  %s162_s7 = int_to_ptr.vmem [resolvable:$true] %s161_s7 }
  0x30   : > { %p636_p10 = scmp.ne.s32.totalorder %s885_s5, %s635_s29  ;;  %s640_s9 = scalar_lea.hbm %s1009_s1, 64 }
  0x31   : > { %p641_p12 = scmp.lt.u32.totalorder %s885_s5, %s1009_s1  ;;  %p642_p0 = scmp.lt.u32.totalorder %s640_s9, %s635_s29 }
  0x32   : > { %p638_p11 = pnand %p636_p10, %p607_p13  ;;  %p644_p3 = scmp.lt.u32.totalorder %s635_s29, %s885_s5 }
  0x33   : > { %p643_p2 = por %p642_p0, %p641_p12 }
  0x34   : > { %p639_p8 = pneg %p638_p11 }
  0x35   : > { %p645_p4 = por %p644_p3, %p643_p2 }
  0x37   : > { %p646_p1 = pnand %p645_p4, %p639_p8 }
  0x39   : > { %649 = shalt.err (!%p646_p1)
}
  0x3a   : > { %s650_s22 = scalar_lea.vmem %s162_s7, 32  ;;  %s752_s19 = smov [#allocation7]  }
  0x3b   : > { %p651_p5 = scmp.ne.s32.totalorder %s162_s7, %s650_s22  ;;  %s655_s23 = sshll.u32 %s752_s19, 4  ;;  %s656_s23 = int_to_ptr.vmem [resolvable:$false] %s655_s23 }
  0x3c   : > { %s657_s25 = scalar_lea.vmem %s656_s23, 64  ;;  %p658_p7 = scmp.lt.s32.totalorder %s162_s7, %s656_s23 }
  0x3d   : > { %p653_p10 = pnand %p651_p5, %p607_p13  ;;  %p659_p6 = scmp.lt.s32.totalorder %s657_s25, %s650_s22 }
  0x3f   : > { %p654_p11 = pneg %p653_p10  ;;  %p660_p0 = por %p659_p6, %p658_p7 }
  0x41   : > { %p661_p12 = pnand %p660_p0, %p654_p11 }
  0x43   : > { %664 = shalt.err (!%p661_p12)
}
  0x44   : > { %539 = dma.hbm_to_vmem [thread:$0]  (!%p838_p9), %s885_s5, 32, %s162_s7, %s148_s27  }
  0x45   : > { %p1018_p8 = scmp.ne.s32.totalorder %s1017_s24, 0 }
  0x46   : > { %s172_s26 = sand.u32 (!%p1018_p8), 1, %s733_s10   ;;  %p1019_p13 = scmp.ne.s32.totalorder (!%p1018_p8), %s1013_s20, 0 }
  0x47   : > { %170 = sbr.rel (%p1018_p8) target bundleno = 348 (0x15c), region = 28  ;;  %s511_s28 = sshll.u32 (!%p1018_p8), %s172_s26, 3 }
  0x48   : > { %s173_s4 = scalar_lea.sflag (!%p1018_p8), [#allocation5], %s172_s26  ;;  %s176_s6 = scalar_lea.vmem (!%p1018_p8), [#allocation4], %s511_s28 }
  0x4e   : > { %716 = dma.done.wait (%p1019_p13), %s173_s4, 128  }
  0x4f   : > { %718 = vsyncadd (%p1019_p13), %s173_s4, 4294967168  ;;  %s512_s29 = sshll.u32 %s172_s26, 1  ;;  %s182_s3 = scalar_lea.sflag [#allocation8], %s172_s26 }
  0x50   : > { %s185_s30 = scalar_lea.vmem [#allocation7], %s512_s29 }
  0x51   : > { %720 = dma.done.wait (%p1019_p13), %s182_s3, 32  }
  0x52   : > { %722 = vsyncadd (%p1019_p13), %s182_s3, 4294967264  ;;  %p208_p7 = scmp.eq.s32.totalorder %s741_s12, 0 }
  0x53   : > { %v214_v0 = vlaneseq (%p208_p7)  ;;  %v753_v1 = vmov (%p208_p7), 0.0  }
  0x54   : > { %213 = sbr.rel (!%p208_p7) target bundleno = 91 (0x5b), region = 40 }
  0x55   : > { %vm216_vm0 = vcmp.lt.s32.totalorder (%p208_p7), %v214_v0, 256 }
  0x56   : > { %218 = vst.msk [vmem:[#allocation2] sm:$0x3] (%p208_p7), %vm216_vm0, %v753_v1  ;;  %219 = vst.msk [vmem:[#allocation3] sm:$0x3] (%p208_p7), %vm216_vm0, %v753_v1 }
  0x5b PF: > { %v220_v2 = vld [vmem:[%s176_s6] sm:$0xff]  ;;  %v238_v3 = vlaneseq  ;;  %v754_v4 = vmov 1966171168   ;;  %vm256_vm1 = vcmask 1043456   ;;  %p362_p9 = scmp.eq.s32.totalorder %s741_s12, 1  ;;  %v755_v8 = vmov 1  }
  0x5c   : > { %v236_v5 = vunpack.c.l.s4 %v754_v4  ;;  %v254_v7 = vcombine.high %v220_v2, %v220_v2  ;;  %v234_v9 = vcombine.low %v755_v8, %v755_v8  ;;  %v257_v11 = vsel %vm256_vm1, %v220_v2, -inf  ;;  %v221_v16 = vld [vmem:[%s185_s30] sm:$0x3] }
  0x5d   : > { %v239_v6 = vshrl.u32 %v238_v3, 7  ;;  %v258_v12 = vrot.slane %v257_v11, 4  ;;  %vm231_vm2 = vcmp.gt.s32.totalorder %v221_v16, 0  ;;  %v357_v25 = vld [vmem:[#allocation3] sm:$0x3]  ;;  %vm930_vm5 = vcmp.lt.s32.totalorder %v238_v3, 256 }
  0x5e   : > { %v237_v10 = vunpack.c.0.s8 %v236_v5  ;;  %v264_v13 = vsel %vm256_vm1, %v254_v7, -inf  ;;  %v756_v30 = vmov 0.0   ;;  %v514_v36 = vadd.s32 4294967295, %v221_v16 }
  0x5f   : > { %v265_v15 = vrot.slane %v264_v13, 4  ;;  %v259_v17 = vmax.f32 %v257_v11, %v258_v12  ;;  %v938_v39 = vsub.s32 0, %v239_v6  ;;  %v942_v41 = vsub.s32 1, %v239_v6 }
  0x60   : > { %v922_v14 = vsub.s32 %v237_v10, %v239_v6  ;;  %vm379_vm8 = vcmask (%p362_p9), 1040384   ;;  %vm404_vm9 = vcmask (%p362_p9), 0  }
  0x61   : > { %v266_v19 = vmax.f32 %v264_v13, %v265_v15  ;;  %v260_v20 = vrot.slane %v259_v17, 2 }
  0x62   : > { %v241_v18 = vrot.slane %v234_v9, %v922_v14 }
  0x63   : > { %v267_v22 = vrot.slane %v266_v19, 2  ;;  %v261_v23 = vmax.f32 %v259_v17, %v260_v20 }
  0x64   : > { %v248_v21 = vrot.slane %v241_v18, %v922_v14 }
  0x65   : > { %v268_v24 = vmax.f32 %v266_v19, %v267_v22  ;;  %v262_v27 = vrot.slane %v261_v23, 1 }
  0x66   : > { %vm249_vm3 = vcmp.ne.s32.totalorder %v248_v21, 0 }
  0x67   : > { %vm926_vm4 = vmand %vm231_vm2, %vm249_vm3  ;;  %v269_v28 = vrot.slane %v268_v24, 1  ;;  %v263_v32 = vmax.f32 %v261_v23, %v262_v27  ;;  %v331_v23 = vld [vmem:[#allocation2] sm:$0x3] }
  0x68   : > { %v515_v31 = vsel %vm926_vm4, 1.0, %v756_v30  ;;  %v252_v40 = vsel %vm926_vm4, %v514_v36, 0 }
  0x69   : > { %v360_v33 = vadd.f32 %v515_v31, %v357_v25  ;;  %v270_v34 = vmax.f32 %v268_v24, %v269_v28  ;;  %v306_v42 = vrot.slane %v252_v40, %v938_v39  ;;  %v310_v43 = vrot.slane %v252_v40, %v942_v41 }
  0x6b   : > { %361 = vst.msk [vmem:[#allocation3] sm:$0x3] %vm930_vm5, %v360_v33  ;;  %v273_v35 = vcombine.low %v263_v32, %v270_v34  ;;  %vm311_vm6 = vcmp.eq.s32.totalorder %v239_v6, %v306_v42  ;;  %vm312_vm7 = vcmp.eq.s32.totalorder %v239_v6, %v310_v43 }
  0x6c   : > { %v313_v44 = vsel %vm311_vm6, %v220_v2, 0.0  ;;  %v314_v48 = vsel %vm312_vm7, %v254_v7, 0.0 }
  0x6d   : > { %v275_v37 = vsub.f32 %v220_v2, %v273_v35  ;;  %v315_v50 = vsel %vm256_vm1, %v313_v44, 0.0  ;;  %v322_v54 = vsel %vm256_vm1, %v314_v48, 0.0 }
  0x6e   : > { %v316_v55 = vrot.slane %v315_v50, 4  ;;  %v323_v58 = vrot.slane %v322_v54, 4 }
  0x6f   : > { %v276_v38 = vmul.f32 1.442695, %v275_v37 }
  0x70   : > { %v317_v61 = vadd.f32 %v316_v55, %v315_v50  ;;  %v324_v0 = vadd.f32 %v323_v58, %v322_v54 }
  0x71   : > { %597 = vpow2.f32 %v276_v38 }
  0x72   : > { %v318_v3 = vrot.slane %v317_v61, 2  ;;  %v325_v5 = vrot.slane %v324_v0, 2  ;;  %v385_v28 = vld [vmem:[#allocation3] sm:$0x3] (%p362_p9) }
  0x73   : > { %v390_v31 = vrot.slane (%p362_p9), %v385_v28, %v938_v39 }
  0x74   : > { %v319_v6 = vadd.f32 %v318_v3, %v317_v61  ;;  %v326_v7 = vadd.f32 %v325_v5, %v324_v0 }
  0x75   : > { %v397_v26 = vsel (%p362_p9), %vm379_vm8, %v390_v31, 0.0 }
  0x76   : > { %v320_v8 = vrot.slane %v319_v6, 1  ;;  %v327_v9 = vrot.slane %v326_v7, 1 }
  0x78   : > { %v321_v12 = vadd.f32 %v320_v8, %v319_v6  ;;  %v328_v17 = vadd.f32 %v327_v9, %v326_v7 }
  0x7b   : > { %v598_v45 = vpop.eup %597 }
  0x7c   : > { %v279_v46 = vcombine.high %v598_v45, %v598_v45  ;;  %v281_v47 = vsel %vm256_vm1, %v598_v45, 0.0 }
  0x7d   : > { %v282_v49 = vrot.slane %v281_v47, 4 }
  0x7e   : > { %v288_v51 = vsel %vm256_vm1, %v279_v46, 0.0 }
  0x7f   : > { %v283_v52 = vadd.f32 %v282_v49, %v281_v47  ;;  %v289_v53 = vrot.slane %v288_v51, 4 }
  0x81   : > { %v284_v56 = vrot.slane %v283_v52, 2  ;;  %v290_v57 = vadd.f32 %v289_v53, %v288_v51 }
  0x83   : > { %v285_v59 = vadd.f32 %v284_v56, %v283_v52  ;;  %v291_v60 = vrot.slane %v290_v57, 2 }
  0x85   : > { %v286_v62 = vrot.slane %v285_v59, 1  ;;  %v292_v63 = vadd.f32 %v291_v60, %v290_v57 }
  0x87   : > { %v287_v1 = vadd.f32 %v286_v62, %v285_v59  ;;  %v293_v2 = vrot.slane %v292_v63, 1 }
  0x89   : > { %v294_v4 = vadd.f32 %v293_v2, %v292_v63  ;;  %599 = vlog2.f32 %v287_v1 }
  0x8b   : > { %601 = vlog2.f32 %v294_v4 }
  0x93   : > { %v600_v10 = vpop.eup %599 }
  0x94   : > { %v296_v11 = vmul.f32 0.6931472, %v600_v10 }
  0x95   : > { %v602_v13 = vpop.eup %601 }
  0x96   : > { %v298_v15 = vmul.f32 0.6931472, %v602_v13  ;;  %v299_v16 = vadd.f32 %v296_v11, %v263_v32  ;;  %v394_v32 = vrot.slane (%p362_p9), %v385_v28, %v942_v41 }
  0x98   : > { %v300_v18 = vadd.f32 %v298_v15, %v270_v34  ;;  %v329_v19 = vsub.f32 %v299_v16, %v321_v12  ;;  %v398_v34 = vsel (%p362_p9), %vm379_vm8, %v394_v32, 0.0 }
  0x99   : > { %v399_v29 = vadd.f32 (%p362_p9), %v398_v34, %v397_v26 }
  0x9a   : > { %v330_v20 = vsub.f32 %v300_v18, %v328_v17 }
  0x9b   : > { %400 = vadd.xlane.f32.xlu0 (%p362_p9), %v399_v29 }
  0x9c   : > { %v334_v21 = vcombine.low %v329_v19, %v330_v20 }
  0x9e   : > { %v341_v22 = vrot.slane %v334_v21, %v922_v14 }
  0x9f   : > { %366 = sbr.rel (!%p362_p9) target bundleno = 323 (0x143), region = 44 }
  0xa0   : > { %v348_v24 = vrot.slane %v341_v22, %v922_v14 }
  0xa2   : > { %v350_v25 = vsel %vm926_vm4, %v348_v24, 0.0 }
  0xa3   : > { %v351_v27 = vadd.f32 %v350_v25, %v331_v23 }
  0xa5   : > { %356 = vst.msk [vmem:[#allocation2] sm:$0x3] %vm930_vm5, %v351_v27 }
  0xac   : > { %v367_v30 = vld [vmem:[#allocation2] sm:$0x3] }
  0xad   : > { %v372_v33 = vrot.slane %v367_v30, %v938_v39  ;;  %v376_v14 = vrot.slane %v367_v30, %v942_v41 }
  0xaf   : > { %v380_v35 = vsel %vm379_vm8, %v372_v33, 0.0  ;;  %v381_v36 = vsel %vm379_vm8, %v376_v14, 0.0 }
  0xb0   : > { %v382_v37 = vadd.f32 %v381_v36, %v380_v35 }
  0xb2   : > { %383 = vadd.xlane.f32.xlu0 %v382_v37 }
 0x128   : > { %v401_v38 = vpop.xlane.xlu0 %400 }
 0x129   : > { %603 = vrcp.f32 %v401_v38 }
 0x133   : > { %v604_v42 = vpop.eup %603 }
 0x13f   : > { %v384_v40 = vpop.xlane.xlu0 %383 }
 0x140   : > { %v403_v43 = vmul.f32 %v604_v42, %v384_v40 }
 0x142   : > { %405 = vst.msk [vmem:[#allocation9] sm:$0x1] %vm404_vm9, %v403_v43 }
 0x143 PF: > { %p964_p6 = scmp.eq.s32.totalorder %s501_s15, 1  ;;  %s757_s20 = smov [#allocation9]  }
 0x144   : > { %s413_s24 = sshll.u32 %s757_s20, 4  ;;  %s414_s24 = int_to_ptr.vmem [resolvable:$true] %s413_s24 }
 0x145   : > { %s665_s5 = scalar_lea.vmem %s414_s24, 16  ;;  %s671_s7 = scalar_lea.vmem %s414_s24, 32 }
 0x146   : > { %p666_p2 = scmp.ne.s32.totalorder %s414_s24, %s665_s5  ;;  %p672_p1 = scmp.lt.s32.totalorder %s414_s24, %s414_s24 }
 0x147   : > { %p673_p5 = scmp.lt.s32.totalorder %s671_s7, %s665_s5 }
 0x148   : > { %p667_p3 = pnand %p666_p2, %p964_p6 }
 0x149   : > { %p674_p10 = por %p673_p5, %p672_p1 }
 0x14a   : > { %p668_p4 = pneg %p667_p3 }
 0x14c   : > { %p675_p11 = pnand %p674_p10, %p668_p4 }
 0x14e   : > { %678 = shalt.err (!%p675_p11)
}
 0x14f   : > { %s679_s8 = scalar_lea.hbm %s1010_s2, 16 }
 0x150   : > { %p680_p0 = scmp.ne.s32.totalorder %s1010_s2, %s679_s8  ;;  %p685_p13 = scmp.lt.u32.totalorder %s679_s8, %s1010_s2 }
 0x152   : > { %p681_p12 = pnand %p680_p0, %p964_p6 }
 0x154   : > { %p682_p8 = pneg %p681_p12 }
 0x156   : > { %p687_p7 = pnand %p685_p13, %p682_p8 }
 0x158   : > { %690 = shalt.err (!%p687_p7)
}
 0x159   : > { %530 = dma.vmem_to_hbm [thread:$0]  (%p964_p6), %s414_s24, 16, %s1010_s2, [#allocation6]  }
 0x15a   : > { %724 = dma.done.wait (%p964_p6), [#allocation6], 16  }
 0x15b   : > { %726 = vsyncadd (%p964_p6), [#allocation6], 4294967280 }
 0x15c PF: > { %s19_s14 = sadd.s32 1, %s749_s14   ;;  %s1025_s9 = smov %s733_s10 }
 0x15d   : > { %p16_p9 = scmp.ge.s32.totalorder %s19_s14, 4   ;;  %s1026_s10 = smov %s737_s11 }
 0x15e   : > { %s1027_s11 = smov %s824_s21  ;;  %s1028_s12 = smov %s745_s13 }
 0x15f   : > { %s1029_s13 = smov %s1031_s16  ;;  %18 = sbr.rel (!%p16_p9) target bundleno = 7 (0x7), region = 86 }
 0x166   :  { %426 = vsyncpa [#allocation5], 1 }
 0x167   :  { %428 = vsyncpa [#allocation5 + $0x1], 1 }
 0x168   :  { %429 = vsyncpa [#allocation8], 1 }
 0x169   :  { %431 = vsyncpa [#allocation8 + $0x1], 1 }
 0x16a   :  { %432 = vsyncpa [#allocation6], 1 }
 0x16b   :  { %434 = vsyncpa [#allocation6 + $0x1], 1 }

</bundles_post_ra>
